<compile_context>
chip_gen: v6e
topology: v6e:2x2x1
jax: 0.10.0
libtpu: 0.0.40
codegen_flags: <defaults>
</compile_context>

<pallas_src>
import math

import jax
import jax.numpy as jnp
from jax.experimental import pallas as pl
from jax.experimental.pallas import tpu as pltpu

_HIGHEST = jax.lax.Precision.HIGHEST


def _default_act_dtype():
    """bf16 activations / tanh only where the VPU/EUP are bf16-capable (v6e, v7x)."""
    try:
        kind = jax.devices()[0].device_kind.lower()
    except Exception:
        return jnp.float32
    if any(tag in kind for tag in ("v6", "v7", "7x", "trillium")):
        return jnp.bfloat16
    return jnp.float32  # v5e and older: bf16 VPU/EUP not available, casts are pure overhead


# --------------------------------------------------------------------------- #
# Kernel
# --------------------------------------------------------------------------- #
def _make_kernel(n_hidden_extra, n_out, use_vpu_out, matmul_dtype, act_dtype, mxu_precision):
    """Fused kernel for `n_hidden_extra` extra (Linear+Tanh) layers and `n_out`
    output channels.  Activation layout is (H, N_tile): N sits on the lane axis."""

    def kernel(x_ref, zb_ref, *refs):
        # refs layout: wc_t, [w_t_i, b_i]*n_hidden_extra, wout, bout, out
        wc_ref = refs[0]
        hidden_refs = refs[1:1 + 2 * n_hidden_extra]
        wout_ref, bout_ref, out_ref = refs[-3], refs[-2], refs[-1]

        xt = x_ref[0]                                # (2, Nt)  lane-dense coords
        gx = xt[0:1, :]                              # (1, Nt)
        gy = xt[1:2, :]                              # (1, Nt)
        zb = zb_ref[0]                               # (H, 1)   bc + z @ Wz  (per-batch const)
        wc = wc_ref[...]                             # (H, 2)

        # Coord linear (K=2): two VPU broadcast FMAs — an MXU matmul would be nearly
        # empty — then add the pre-folded per-batch bias.
        pre = wc[:, 0:1] * gx + wc[:, 1:2] * gy + zb               # (H, Nt) f32
        h = jnp.tanh(pre.astype(act_dtype))                        # EUP (bf16 on v6e/v7x)

        # Extra hidden Linear+Tanh layers: real MXU matmuls, bf16 operands in fast
        # mode, f32 accumulation.
        for li in range(n_hidden_extra):
            w_t = hidden_refs[2 * li][...].astype(matmul_dtype)    # (H, H)  (out, in)
            b = hidden_refs[2 * li + 1][...]                       # (H, 1)  f32
            hh = jnp.dot(w_t, h.astype(matmul_dtype),
                         preferred_element_type=jnp.float32,
                         precision=mxu_precision)
            h = jnp.tanh((hh + b).astype(act_dtype))

        if use_vpu_out:
            # n_out == 1 with hidden layers: the MXU is already busy, so keep the
            # width-1 output on the VPU (multiply + sublane reduce).
            y = jnp.sum(h.astype(jnp.float32) * wout_ref[...],
                        axis=0, keepdims=True) + bout_ref[...]
        else:
            # (n_out, H) @ (H, Nt).  For the shallow n_out==1 config this uses the
            # otherwise-idle MXU and frees VPU/XLU slots for the tanh path.
            y = jnp.dot(wout_ref[...].astype(matmul_dtype), h.astype(matmul_dtype),
                        preferred_element_type=jnp.float32,
                        precision=mxu_precision) + bout_ref[...]

        out_ref[0] = y.astype(out_ref.dtype)         # lane-dense, unmasked store

    return kernel


# --------------------------------------------------------------------------- #
# Tiling
# --------------------------------------------------------------------------- #
def _choose_row_tile(n, batch, hidden_dim, n_out, act_itemsize,
                     budget_bytes=24 * 1024 * 1024, max_tile=4096):
    """Largest lane-aligned row tile whose working set fits the VMEM budget,
    preferring >= 2 total grid steps so both v7x TensorCores get work."""

    def working_set(nt):
        io = 2 * (2 * nt * 4) + 2 * (n_out * nt * 4)                     # double-buffered coords/out
        act = 3 * hidden_dim * nt * 4 + hidden_dim * nt * act_itemsize   # live activation temporaries
        return io + act

    candidates = [nt for nt in range(128, min(n, max_tile) + 1, 128)
                  if n % nt == 0 and working_set(nt) <= budget_bytes]
    multi_step = [nt for nt in candidates if batch * (n // nt) >= 2]
    if multi_step:
        return max(multi_step)
    if candidates:
        return max(candidates)
    return n  # small / odd N: single full-extent (possibly masked) tile


# --------------------------------------------------------------------------- #
# Wrapper
# --------------------------------------------------------------------------- #
def spatial_generator_forward(x, z, params, img_shape, *, precision="fast"):
    """Fused SpatialGenerator forward.

    x: (B, N, 2) float32 coordinates, or (N, 2) for a grid shared across the batch
       (the common spatial-VAE case — avoids B copies of the coordinate DMA)
    z: (B, L) or (L,) float32 latent codes (ignored if params['wz'] is None)
    params: 'wc' (2,H), 'bc' (1,H), 'wz' (L,H) or None,
            'hidden' list of ((H,H),(1,H)) pairs, 'wout' (H,n_out), 'bout' (1,n_out)
    precision: "fast" (bf16 MXU operands; bf16 tanh on v6e/v7x) or "exact" (all f32)
    Returns: (B, *img_shape)   (== y.view(b, *img_shape) in the PyTorch module)
    """
    x = jnp.asarray(x, jnp.float32)
    H = params["wc"].shape[1]
    n_out = params["wout"].shape[1]
    n_hidden = len(params["hidden"])

    if precision == "exact":
        matmul_dtype, act_dtype, mxu_precision = jnp.float32, jnp.float32, _HIGHEST
    else:
        matmul_dtype, act_dtype, mxu_precision = jnp.bfloat16, _default_act_dtype(), None

    # --- coords: lane-dense (.., 2, N); shared (N, 2) grids are passed once ---
    if z is not None:
        z = jnp.asarray(z, jnp.float32)
        if z.ndim == 1:
            z = z[None]
    if x.ndim == 2:
        N = x.shape[0]
        B = z.shape[0] if (params.get("wz") is not None and z is not None) else 1
        x_t = x.T[None]                                            # (1, 2, N)  shared grid
        coords_map = lambda b, t: (0, 0, t)
    else:
        B, N, _ = x.shape
        x_t = jnp.transpose(x, (0, 2, 1))                          # (B, 2, N)
        coords_map = lambda b, t: (b, 0, t)
    assert x_t.shape[-2] == 2
    assert math.prod(img_shape) == N * n_out, (img_shape, N, n_out)

    # --- pre-fold the per-batch constant bias: zb = bc + z @ Wz  -> (B, H, 1) ---
    if params.get("wz") is not None:
        zb = params["bc"] + jnp.dot(z, params["wz"], precision=_HIGHEST)   # tiny (B,L)x(L,H)
    else:
        zb = jnp.broadcast_to(params["bc"], (B, H))
    zb = zb.reshape(B, H, 1).astype(jnp.float32)

    # --- weights, pre-transposed for the (H, N) activation layout.  Hidden matrices
    # and wout are stored in HBM at the matmul dtype (bf16 in fast mode). ---
    use_vpu_out = (n_out == 1 and n_hidden > 0)
    weight_args = [params["wc"].T.astype(jnp.float32)]                        # (H, 2)
    for (w, b) in params["hidden"]:
        weight_args += [w.T.astype(matmul_dtype), b.T.astype(jnp.float32)]    # (H,H), (H,1)
    if use_vpu_out:
        wout_arg = params["wout"].astype(jnp.float32)                         # (H, 1)
    else:
        wout_arg = params["wout"].T.astype(matmul_dtype)                      # (n_out, H)
    bout_arg = params["bout"].T.astype(jnp.float32)                           # (n_out, 1)
    weight_args += [wout_arg, bout_arg]

    # --- tiling / grid ---
    act_itemsize = jnp.dtype(act_dtype).itemsize
    nt = _choose_row_tile(N, B, H, n_out, act_itemsize)
    grid = (B, N // nt)

    def full_spec(a):
        nd = a.ndim
        # Constant index_map -> the block is fetched once and stays resident.
        # TODO(synk): single-buffer these resident weights (pipeline_mode=pl.Buffered(1))
        # to halve weight VMEM for large H once the auto-pipeline honours it.
        return pl.BlockSpec(a.shape, lambda b, t, _nd=nd: (0,) * _nd)

    in_specs = [
        pl.BlockSpec((1, 2, nt), coords_map),              # coords tile (shared or per-batch)
        pl.BlockSpec((1, H, 1), lambda b, t: (b, 0, 0)),   # per-batch folded bias
    ] + [full_spec(a) for a in weight_args]

    out_specs = pl.BlockSpec((1, n_out, nt), lambda b, t: (b, 0, t))

    # --- VMEM limit & cost estimate ---
    weight_bytes = sum(int(a.size) * jnp.dtype(a.dtype).itemsize for a in weight_args)
    est_vmem = (2 * (2 * nt * 4) + 2 * (n_out * nt * 4) + 2 * H * 4
                + 2 * weight_bytes + 4 * H * nt * 4)
    vmem_limit = int(min(48 * 1024 * 1024, max(16 * 1024 * 1024, 2 * est_vmem)))

    flops = 2 * B * N * H * (2 + n_hidden * H + n_out) + B * N * H * (1 + n_hidden)
    transcendentals = B * N * H * (1 + n_hidden)
    bytes_accessed = 4 * (int(x_t.size) + int(zb.size) + B * n_out * N) + weight_bytes

    y = pl.pallas_call(
        _make_kernel(n_hidden, n_out, use_vpu_out, matmul_dtype, act_dtype, mxu_precision),
        out_shape=jax.ShapeDtypeStruct((B, n_out, N), jnp.float32),
        grid=grid,
        in_specs=in_specs,
        out_specs=out_specs,
        compiler_params=pltpu.CompilerParams(
            dimension_semantics=("parallel", "parallel"),
            vmem_limit_bytes=vmem_limit,
        ),
        cost_estimate=pl.CostEstimate(
            flops=int(flops),
            transcendentals=int(transcendentals),
            bytes_accessed=int(bytes_accessed),
        ),
    )(x_t, zb, *weight_args)

    # (B, n_out, N) -> (B, N, n_out) -> (B, *img_shape)  == y.view(b, *img_shape).
    # NOTE: for n_out > 1 this transpose is an extra HBM pass over the output;
    # consumers that accept channel-first (B, n_out, N) should take `y` directly.
    return jnp.transpose(y, (0, 2, 1)).reshape((B,) + tuple(img_shape))


# --------------------------------------------------------------------------- #
# Parameter init (shapes match the PyTorch module; weights stored (in, out))
# --------------------------------------------------------------------------- #
def init_params(key, latent_dim, hidden_dim, n_out=1, num_layers=1):
    def nk():
        nonlocal key
        key, sub = jax.random.split(key)
        return sub

    scale = 0.1
    params = {
        "wc": scale * jax.random.normal(nk(), (2, hidden_dim), jnp.float32),
        "bc": scale * jax.random.normal(nk(), (1, hidden_dim), jnp.float32),
        "wz": (scale * jax.random.normal(nk(), (latent_dim, hidden_dim), jnp.float32)
               if latent_dim > 0 else None),
        "hidden": [],
    }
    for _ in range(num_layers - 1):
        w = scale * jax.random.normal(nk(), (hidden_dim, hidden_dim), jnp.float32)
        b = scale * jax.random.normal(nk(), (1, hidden_dim), jnp.float32)
        params["hidden"].append((w, b))
    params["wout"] = scale * jax.random.normal(nk(), (hidden_dim, n_out), jnp.float32)
    params["bout"] = scale * jax.random.normal(nk(), (1, n_out), jnp.float32)
    return params


# --------------------------------------------------------------------------- #
# Pure-JAX reference mirroring the PyTorch forward (kept at f32/HIGHEST locally)
# --------------------------------------------------------------------------- #
def reference_forward(x, z, params, img_shape):
    x = jnp.asarray(x, jnp.float32)
    if x.ndim == 2:
        x = x[None]
    bx, n, _ = x.shape
    h = jnp.dot(x.reshape(bx * n, -1), params["wc"], precision=_HIGHEST) + params["bc"]
    h = h.reshape(bx, n, -1)
    if params.get("wz") is not None:
        zz = z if z.ndim == 2 else z[None]
        h = h + jnp.dot(zz, params["wz"], precision=_HIGHEST)[:, None, :]
    b = h.shape[0]
    h = jnp.tanh(h)
    for (w, bb) in params["hidden"]:
        h = jnp.tanh(jnp.dot(h, w, precision=_HIGHEST) + bb)
    y = jnp.dot(h, params["wout"], precision=_HIGHEST) + params["bout"]
    return y.reshape((b,) + tuple(img_shape))


# --------------------------------------------------------------------------- #
# Demo / self-test
# --------------------------------------------------------------------------- #
if __name__ == "__main__":
    B = 2
    IMG = (16, 16)
    N = IMG[0] * IMG[1]
    LATENT = 4
    HIDDEN = 32

    key = jax.random.PRNGKey(0)
    kx, kz, kp1, kp2, kp3 = jax.random.split(key, 5)

    # spatial-VAE style coordinate grid in [-1, 1]
    ys = jnp.linspace(-1.0, 1.0, IMG[0])
    xs = jnp.linspace(-1.0, 1.0, IMG[1])
    gy, gx = jnp.meshgrid(ys, xs, indexing="ij")
    coords = jnp.stack([gx.ravel(), gy.ravel()], axis=-1).astype(jnp.float32)   # (N, 2)
    z = jax.random.normal(kz, (B, LATENT), jnp.float32)

    # --- test 1: default config (num_layers=1, n_out=1), shared (N, 2) grid ---
    params1 = init_params(kp1, LATENT, HIDDEN, n_out=1, num_layers=1)
    ref1 = reference_forward(coords, z, params1, IMG)
    img1_exact = jax.block_until_ready(
        spatial_generator_forward(coords, z, params1, IMG, precision="exact"))
    img1_fast = jax.block_until_ready(
        spatial_generator_forward(coords, z, params1, IMG, precision="fast"))
    assert img1_exact.shape == (B,) + IMG, img1_exact.shape
    assert jnp.allclose(img1_exact, ref1, atol=1e-5, rtol=1e-4), "mismatch (test 1, exact)"
    assert jnp.allclose(img1_fast, ref1, atol=8e-2, rtol=0.0), "mismatch (test 1, fast/bf16)"

    # --- test 2: hidden-layer MXU path + general n_out, per-batch coordinates ---
    IMG2 = (16, 16, 2)     # N * n_out == prod(img_shape)
    xb = (jnp.broadcast_to(coords[None], (B, N, 2))
          + 0.01 * jax.random.normal(kx, (B, N, 2), jnp.float32))
    params2 = init_params(kp2, LATENT, HIDDEN, n_out=2, num_layers=2)
    ref2 = reference_forward(xb, z, params2, IMG2)
    img2_exact = jax.block_until_ready(
        spatial_generator_forward(xb, z, params2, IMG2, precision="exact"))
    img2_fast = jax.block_until_ready(
        spatial_generator_forward(xb, z, params2, IMG2, precision="fast"))
    assert img2_exact.shape == (B,) + IMG2, img2_exact.shape
    assert jnp.allclose(img2_exact, ref2, atol=1e-5, rtol=1e-4), "mismatch (test 2, exact)"
    assert jnp.allclose(img2_fast, ref2, atol=8e-2, rtol=0.0), "mismatch (test 2, fast/bf16)"

    # --- test 3: n_out==1 with hidden layers -> VPU output-reduce branch ---
    params3 = init_params(kp3, LATENT, HIDDEN, n_out=1, num_layers=2)
    ref3 = reference_forward(coords, z, params3, IMG)
    img3 = jax.block_until_ready(
        spatial_generator_forward(coords, z, params3, IMG, precision="exact"))
    assert jnp.allclose(img3, ref3, atol=1e-5, rtol=1e-4), "mismatch (test 3, exact)"

    print("KERNEL_OK")
</pallas_src>

<mosaic_0001>
module attributes {stable_mosaic.version = 11 : i64} {
  func.func @kernel(%arg0: i32, %arg1: i32, %arg2: memref<1x2x256xf32, #tpu.memory_space<vmem>>, %arg3: memref<1x32x1xf32, #tpu.memory_space<vmem>>, %arg4: memref<32x2xf32, #tpu.memory_space<vmem>>, %arg5: memref<1x32xf32, #tpu.memory_space<vmem>>, %arg6: memref<1x1xf32, #tpu.memory_space<vmem>>, %arg7: memref<1x1x256xf32, #tpu.memory_space<vmem>>) attributes {dimension_semantics = [#tpu.dimension_semantics<parallel>, #tpu.dimension_semantics<parallel>], iteration_bounds = array<i64: 2, 1>, scalar_prefetch = 0 : i64, scratch_operands = 0 : i64, tpu.core_type = #tpu.core_type<tc>, window_params = [{transform_indices = @transform_0, window_bounds = array<i64: 1, 2, 256>}, {transform_indices = @transform_1, window_bounds = array<i64: 1, 32, 1>}, {pipeline_mode = #tpu.pipeline_mode<synchronous>, transform_indices = @transform_2, window_bounds = array<i64: 32, 2>}, {pipeline_mode = #tpu.pipeline_mode<synchronous>, transform_indices = @transform_3, window_bounds = array<i64: 1, 32>}, {pipeline_mode = #tpu.pipeline_mode<synchronous>, transform_indices = @transform_4, window_bounds = array<i64: 1, 1>}, {transform_indices = @transform_5, window_bounds = array<i64: 1, 1, 256>}]} {
    %c0 = arith.constant 0 : index
    %c0_0 = arith.constant 0 : index
    %c0_1 = arith.constant 0 : index
    %0 = vector.load %arg2[%c0, %c0_0, %c0_1] : memref<1x2x256xf32, #tpu.memory_space<vmem>>, vector<1x2x256xf32>
    %1 = vector.shape_cast %0 : vector<1x2x256xf32> to vector<2x256xf32>
    %2 = vector.extract_strided_slice %1 {offsets = [0, 0], sizes = [1, 256], strides = [1, 1]} : vector<2x256xf32> to vector<1x256xf32>
    %3 = vector.extract_strided_slice %1 {offsets = [1, 0], sizes = [1, 256], strides = [1, 1]} : vector<2x256xf32> to vector<1x256xf32>
    %c0_2 = arith.constant 0 : index
    %c0_3 = arith.constant 0 : index
    %c0_4 = arith.constant 0 : index
    %4 = vector.load %arg3[%c0_2, %c0_3, %c0_4] : memref<1x32x1xf32, #tpu.memory_space<vmem>>, vector<1x32x1xf32>
    %5 = vector.shape_cast %4 : vector<1x32x1xf32> to vector<32x1xf32>
    %c0_5 = arith.constant 0 : index
    %c0_6 = arith.constant 0 : index
    %6 = vector.load %arg4[%c0_5, %c0_6] : memref<32x2xf32, #tpu.memory_space<vmem>>, vector<32x2xf32>
    %7 = vector.extract_strided_slice %6 {offsets = [0, 0], sizes = [32, 1], strides = [1, 1]} : vector<32x2xf32> to vector<32x1xf32>
    %8 = vector.broadcast %7 : vector<32x1xf32> to vector<32x256xf32>
    %9 = vector.broadcast %2 : vector<1x256xf32> to vector<32x256xf32>
    %10 = arith.mulf %8, %9 : vector<32x256xf32>
    %11 = vector.extract_strided_slice %6 {offsets = [0, 1], sizes = [32, 1], strides = [1, 1]} : vector<32x2xf32> to vector<32x1xf32>
    %12 = vector.broadcast %11 : vector<32x1xf32> to vector<32x256xf32>
    %13 = vector.broadcast %3 : vector<1x256xf32> to vector<32x256xf32>
    %14 = arith.mulf %12, %13 : vector<32x256xf32>
    %15 = arith.addf %10, %14 : vector<32x256xf32>
    %16 = vector.broadcast %5 : vector<32x1xf32> to vector<32x256xf32>
    %17 = arith.addf %15, %16 : vector<32x256xf32>
    %18 = math.tanh %17 : vector<32x256xf32>
    %c0_7 = arith.constant 0 : index
    %c0_8 = arith.constant 0 : index
    %19 = vector.load %arg5[%c0_7, %c0_8] : memref<1x32xf32, #tpu.memory_space<vmem>>, vector<1x32xf32>
    %cst = arith.constant dense<0.000000e+00> : vector<1x256xf32>
    %20 = tpu.matmul %19, %18, %cst {dimension_numbers = #tpu.dot_dimension_numbers<[1], [0], [0], [1], [0, 0, 1, 1], [], []>, precision = #tpu.contract_precision<fp32>} : vector<1x32xf32>, vector<32x256xf32>, vector<1x256xf32> -> vector<1x256xf32>
    %c0_9 = arith.constant 0 : index
    %c0_10 = arith.constant 0 : index
    %21 = vector.load %arg6[%c0_9, %c0_10] : memref<1x1xf32, #tpu.memory_space<vmem>>, vector<1x1xf32>
    %22 = vector.broadcast %21 : vector<1x1xf32> to vector<1x256xf32>
    %23 = arith.addf %20, %22 : vector<1x256xf32>
    %c0_11 = arith.constant 0 : index
    %c0_12 = arith.constant 0 : index
    %c0_13 = arith.constant 0 : index
    %24 = vector.load %arg7[%c0_11, %c0_12, %c0_13] : memref<1x1x256xf32, #tpu.memory_space<vmem>>, vector<1x1x256xf32>
    %25 = vector.shape_cast %24 : vector<1x1x256xf32> to vector<1x256xf32>
    %26 = vector.shape_cast %23 : vector<1x256xf32> to vector<1x1x256xf32>
    tpu.vector_store %arg7[%c0_11, %c0_12, %c0_13], %26 {strides = array<i32>} : memref<1x1x256xf32, #tpu.memory_space<vmem>>, vector<1x1x256xf32>,
    return
  }
  func.func @transform_0(%arg0: i32, %arg1: i32) -> (i32, i32, i32) {
    %c0_i32 = arith.constant 0 : i32
    %c0_i32_0 = arith.constant 0 : i32
    %c0_i32_1 = arith.constant 0 : i32
    return %c0_i32, %c0_i32_0, %arg1 : i32, i32, i32
  }
  func.func @transform_1(%arg0: i32, %arg1: i32) -> (i32, i32, i32) {
    %c0_i32 = arith.constant 0 : i32
    %c0_i32_0 = arith.constant 0 : i32
    %c0_i32_1 = arith.constant 0 : i32
    return %arg0, %c0_i32, %c0_i32_0 : i32, i32, i32
  }
  func.func @transform_2(%arg0: i32, %arg1: i32) -> (i32, i32) {
    %c0_i32 = arith.constant 0 : i32
    %c0_i32_0 = arith.constant 0 : i32
    %c0_i32_1 = arith.constant 0 : i32
    return %c0_i32, %c0_i32_0 : i32, i32
  }
  func.func @transform_3(%arg0: i32, %arg1: i32) -> (i32, i32) {
    %c0_i32 = arith.constant 0 : i32
    %c0_i32_0 = arith.constant 0 : i32
    %c0_i32_1 = arith.constant 0 : i32
    return %c0_i32, %c0_i32_0 : i32, i32
  }
  func.func @transform_4(%arg0: i32, %arg1: i32) -> (i32, i32) {
    %c0_i32 = arith.constant 0 : i32
    %c0_i32_0 = arith.constant 0 : i32
    %c0_i32_1 = arith.constant 0 : i32
    return %c0_i32, %c0_i32_0 : i32, i32
  }
  func.func @transform_5(%arg0: i32, %arg1: i32) -> (i32, i32, i32) {
    %c0_i32 = arith.constant 0 : i32
    %c0_i32_0 = arith.constant 0 : i32
    return %arg0, %c0_i32, %arg1 : i32, i32, i32
  }
}

</mosaic_0001>

<bundles_post_ra>
// kernel: tpu_custom_call.1
= control target key start
LH: loop header
LB: loop body
LE: loop exit
PB: predicated region body
PF: predicated region fallthrough
CT: control target
= control target key end

     0   :  { %s1530_s0 = inlined_call_operand.vmem [shape: f32[1,2,256], index: 0, kind: input, shape index: {}]   ;;  %s1531_s1 = inlined_call_operand.vmem [shape: f32[2,32,1], index: 1, kind: input, shape index: {}]   ;;  %s1532_s2 = inlined_call_operand.vmem [shape: f32[32,2], index: 2, kind: input, shape index: {}]   ;;  %s1533_s3 = inlined_call_operand.vmem [shape: f32[1,32], index: 3, kind: input, shape index: {}]   ;;  %s1534_s4 = inlined_call_operand.<no memory space> [shape: f32[1,1], index: 4, kind: input, shape index: {}]   ;;  %s1535_s5 = inlined_call_operand.hbm [shape: f32[2,1,256], index: 5, kind: output, shape index: {}]  }
   0x1   :  { %v10_v0 = vstv %s1534_s4 }
   0x2   :  { %11 = vst [vmem:[#allocation2] sm:$0x1] %v10_v0 }
   0x3   :  { %12 = vsyncpa [#allocation4], 0 }
   0x4   :  { %14 = vsyncpa [#allocation4 + $0x1], 0  ;;  %s1301_s20 = smov 0   ;;  %s1303_s21 = smov 0  }
   0x5   :  { %s1305_s22 = smov 0   ;;  %s1307_s23 = smov 0  }
   0x6   :  { %s1309_s24 = smov 0   ;;  %s1311_s25 = smov 0  }
   0x7 LB: > { %s1087_s4 = sadd.s32 4294967295, %s1261_s25   ;;  %s1088_s26 = sadd.s32 4294967294, %s1261_s25   ;;  %s1261_s25 = sphi %s1311_s25, %s20_s25   ;;  %s1257_s24 = sphi %s1309_s24, %s1542_s24   ;;  %s1253_s23 = sphi %s1307_s23, %s1541_s23   ;;  %s1249_s22 = sphi %s1305_s22, %s1540_s22   ;;  %s1245_s21 = sphi %s1303_s21, %s1539_s21   ;;  %s1241_s20 = sphi %s1301_s20, %s1538_s20  }
   0x8   : > { %s32_s27 = sadd.s32 1, %s1257_s24  ;;  %s156_s28 = sadd.s32 1, %s1249_s22 }
   0x9   : > { %p34_p0 = scmp.ge.s32.totalorder %s32_s27, 2  ;;  %p166_p1 = scmp.ne.s32.totalorder %s1249_s22, %s1245_s21 }
   0xa   : > { %p167_p2 = scmp.eq.s32.totalorder %s1087_s4, 1  ;;  %p172_p3 = scmp.ne.s32.totalorder %s1245_s21, %s1241_s20 }
   0xb   : > { %s1544_s27 = smov (%p34_p0, %s32_s27), 0  ;;  %p173_p5 = scmp.eq.s32.totalorder %s1088_s26, 1 }
   0xc   : > { %p1341_p4 = por %p167_p2, %p166_p1  ;;  %s151_s30 = ssub.s32 %s1257_s24, %s1544_s27 }
   0xd   : > { %p1092_p6 = scmp.ge.s32.totalorder %s1261_s25, 1  ;;  %p154_p7 = scmp.eq.s32.totalorder %s151_s30, 0 }
   0xe   : > { %p1348_p8 = por %p173_p5, %p172_p3  ;;  %p217_p9 = scmp.lt.s32.totalorder %s1261_s25, 3 }
   0xf   : > { %s1354_s7 = scalar_select %p154_p7, %s1249_s22, %s156_s28  }
  0x10   : > { %p218_p10 = pnand %p1092_p6, %p217_p9 }
  0x11   : > { %p256_p11 = scmp.lt.s32.totalorder (!%p218_p10), %s1253_s23, 1  ;;  %s247_s9 = sand.u32 (!%p218_p10), 1, %s1245_s21  }
  0x12   : > { %221 = sbr.rel (%p218_p10) target bundleno = 440 (0x1b8), region = 40  ;;  %s1093_s10 = sshll.u32 (!%p218_p10), %s247_s9, 1 }
  0x13   : > { %s1102_s11 = sshll.u32 (!%p218_p10), %s1253_s23, 5  ;;  %s249_s12 = scalar_lea.vmem (!%p218_p10), [#allocation3], %s1093_s10 }
  0x14   : > { %s1002_s13 = sshll.u32 (!%p218_p10), %s249_s12, 4  ;;  %s1000_s16 = scalar_lea.hbm (!%p218_p10), %s1535_s5, %s1102_s11  ;;  %s1003_s13 = int_to_ptr.vmem [resolvable:$true] %s1002_s13 }
  0x15   : > { %s986_s17 = scalar_lea.sflag (!%p218_p10), [#allocation4], %s247_s9  ;;  %s1267_s19 = smov (!%p218_p10), [#allocation3]  }
  0x17   : > { %v270_v1 = vld [vmem:[%s1532_s2 + $0x18] sm:$0xff]  ;;  %v269_v2 = vld [vmem:[%s1532_s2 + $0x10] sm:$0xff]  ;;  %v1263_v3 = vmov 1   ;;  %v1264_v4 = vmov 0   ;;  %v268_v5 = vld [vmem:[%s1532_s2 + $0x8] sm:$0xff]  ;;  %s257_s14 = scalar_select %p256_p11, %s1253_s23, 1  ;;  %v292_v13 = vlaneseq }
  0x18   : > { %1162 = vset.pattern.permute.xlu0 %v1263_v3  ;;  %1163 = vset.pattern.permute.xlu1 %v1264_v4  ;;  %v267_v6 = vld [vmem:[%s1532_s2] sm:$0xff]  ;;  %v1265_v12 = vmov 0.0   ;;  %vm415_vm0 = vcmask 261120   ;;  %s1189_s23 = sshll.u32 %s1267_s19, 4  ;;  %s1190_s23 = int_to_ptr.vmem [resolvable:$false] %s1189_s23 }
  0x19   : > { %331 = vperm.xlu0 %1162, %v270_v1   ;;  %283 = vperm.xlu1 %1163, %v269_v2   ;;  %s1101_s15 = sshll.u32 %s257_s14, 5  ;;  %v405_v9 = vld [vmem:[#allocation2] sm:$0x1]  ;;  %v1376_v14 = vshrl.u32 %v292_v13, 7  ;;  %vm982_vm1 = vcmp.lt.s32.totalorder %v292_v13, 256  ;;  %s1191_s4 = scalar_lea.vmem %s1190_s23, 64 }
  0x1a   : > { %s260_s18 = scalar_lea.vmem %s1531_s1, %s1101_s15  ;;  %491 = vmatprep.mubr.f32.mxu0 %v1265_v12  ;;  %607 = vmatprep.mubr.f32.mxu1 %v1265_v12  ;;  %v262_v21 = vld [vmem:[%s1530_s0] sm:$0xf]  ;;  %p1192_p1 = scmp.lt.s32.totalorder %s1003_s13, %s1190_s23 }
  0x1b   : > { %v266_v7 = vld [vmem:[%s260_s18 + $0x18] sm:$0xff]  ;;  %v264_v8 = vld [vmem:[%s260_s18 + $0x8] sm:$0xff]  ;;  %v265_v10 = vld [vmem:[%s260_s18 + $0x10] sm:$0xff]  ;;  %v336_v15 = vsub.s32 1, %v1376_v14  ;;  %v340_v16 = vsub.s32 3, %v1376_v14  ;;  %v1381_v17 = vsub.s32 0, %v1376_v14 }
  0x1c   : > { %v263_v11 = vld [vmem:[%s260_s18] sm:$0xff]  ;;  %v298_v18 = vsub.s32 2, %v1376_v14  ;;  %s1185_s18 = scalar_lea.vmem %s1003_s13, 32 }
  0x1d   : > { %1164 = vset.pattern.permute.xlu1 %v1263_v3  ;;  %323 = vperm.xlu0 %1162, %v268_v5   ;;  %v337_v22 = vrot.slane %v262_v21, %v336_v15  ;;  %v341_v23 = vrot.slane %v262_v21, %v340_v16  ;;  %v295_v24 = vrot.slane %v262_v21, %v1381_v17  ;;  %p1186_p12 = scmp.ne.s32.totalorder %s1003_s13, %s1185_s18  ;;  %p1193_p2 = scmp.lt.s32.totalorder %s1191_s4, %s1185_s18 }
  0x1e   : > { %327 = vperm.xlu1 %1164, %v269_v2   ;;  %v299_v25 = vrot.slane %v262_v21, %v298_v18 }
  0x1f   : > { %v347_v28 = vrot.slane %v337_v22, %v336_v15  ;;  %v351_v29 = vrot.slane %v341_v23, %v336_v15  ;;  %v305_v30 = vrot.slane %v295_v24, %v1381_v17  ;;  %p1187_p13 = pnand %p1186_p12, %p1341_p4  ;;  %p1194_p3 = por %p1193_p2, %p1192_p1 }
  0x20   : > { %v309_v31 = vrot.slane %v299_v25, %v1381_v17 }
  0x21   : > { %1166 = vset.pattern.permute.xlu0 %v1264_v4  ;;  %p1188_p0 = pneg %p1187_p13 }
  0x22   : > { %1165 = vset.pattern.permute.xlu1 %v1264_v4  ;;  %288 = vperm.xlu0 %1166, %v270_v1   ;;  %v404_v1 = vld [vmem:[%s1533_s3] sm:$0x1] }
  0x23   : > { %278 = vperm.xlu1 %1165, %v268_v5   ;;  %p1195_p5 = pnand %p1194_p3, %p1188_p0 }
  0x26   : > { %273 = vperm.xlu0 %1166, %v267_v6  }
  0x27   : > { %385 = vperm.xlu1 %1165, %v266_v7  }
  0x2a   : > { %375 = vperm.xlu0 %1166, %v264_v8  }
  0x2b   : > { %1167 = vset.pattern.permute.xlu1 %v1263_v3 }
  0x2c   : > { %319 = vperm.xlu1 %1167, %v267_v6   ;;  %v417_v6 = vsel %vm415_vm0, %v404_v1, 0 }
  0x2e   : > { %408 = vperm.xlu0 %1166, %v405_v9  }
  0x30   : > { %1168 = vset.pattern.permute.xlu1 %v1264_v4 }
  0x31   : > { %380 = vperm.xlu1 %1168, %v265_v10  }
  0x35   : > { %370 = vperm.xlu1 %1168, %v263_v11   ;;  %v1393_v11 = vand.u32 4294901760, %v417_v6 }
  0x37   : > { %v1407_v23 = vsub.f32 %v417_v6, %v1393_v11 }
  0x94   : > { %v284_v19 = vpop.permute.xlu1 %283  ;;  %v332_v20 = vpop.permute.xlu0 %331 }
  0x95   : > { %v358_v32 = vmul.f32 %v347_v28, %v332_v20  ;;  %v359_v33 = vmul.f32 %v351_v29, %v332_v20  ;;  %v314_v56 = vmul.f32 %v305_v30, %v284_v19  ;;  %v315_v57 = vmul.f32 %v309_v31, %v284_v19 }
  0x98   : > { %v324_v26 = vpop.permute.xlu0 %323 }
  0x99   : > { %v328_v27 = vpop.permute.xlu1 %327  ;;  %v354_v38 = vmul.f32 %v347_v28, %v324_v26  ;;  %v355_v39 = vmul.f32 %v351_v29, %v324_v26 }
  0x9a   : > { %v356_v50 = vmul.f32 %v347_v28, %v328_v27  ;;  %v357_v52 = vmul.f32 %v351_v29, %v328_v27 }
  0x9c   : > { %v364_v58 = vadd.f32 %v356_v50, %v314_v56  ;;  %v365_v59 = vadd.f32 %v357_v52, %v315_v57 }
  0x9d   : > { %v289_v34 = vpop.permute.xlu0 %288 }
  0x9e   : > { %v316_v35 = vmul.f32 %v305_v30, %v289_v34  ;;  %v317_v36 = vmul.f32 %v309_v31, %v289_v34  ;;  %v279_v37 = vpop.permute.xlu1 %278 }
  0x9f   : > { %v312_v40 = vmul.f32 %v305_v30, %v279_v37  ;;  %v313_v41 = vmul.f32 %v309_v31, %v279_v37 }
  0xa0   : > { %v366_v42 = vadd.f32 %v358_v32, %v316_v35  ;;  %v367_v43 = vadd.f32 %v359_v33, %v317_v36 }
  0xa1   : > { %v274_v44 = vpop.permute.xlu0 %273  ;;  %v362_v48 = vadd.f32 %v354_v38, %v312_v40  ;;  %v363_v49 = vadd.f32 %v355_v39, %v313_v41 }
  0xa2   : > { %v386_v45 = vpop.permute.xlu1 %385  ;;  %v310_v60 = vmul.f32 %v305_v30, %v274_v44  ;;  %v311_v61 = vmul.f32 %v309_v31, %v274_v44  ;;  %v494_v30 = vand.u32 4294901760, %v1407_v23 }
  0xa3   : > { %v394_v46 = vadd.f32 %v386_v45, %v366_v42  ;;  %v395_v47 = vadd.f32 %v386_v45, %v367_v43 }
  0xa4   : > { %v495_v39 = vsub.f32 %v1407_v23, %v494_v30 }
  0xa5   : > { %1169 = vtanh.f32 %v394_v46  ;;  %v376_v51 = vpop.permute.xlu0 %375 }
  0xa6   : > { %1171 = vtanh.f32 %v395_v47  ;;  %v390_v53 = vadd.f32 %v376_v51, %v362_v48  ;;  %v391_v54 = vadd.f32 %v376_v51, %v363_v49  ;;  %v496_v49 = vand.u32 4294901760, %v495_v39 }
  0xa7   : > { %v320_v55 = vpop.permute.xlu1 %319 }
  0xa8   : > { %1173 = vtanh.f32 %v390_v53  ;;  %v352_v62 = vmul.f32 %v347_v28, %v320_v55  ;;  %v353_v63 = vmul.f32 %v351_v29, %v320_v55 }
  0xa9   : > { %1175 = vtanh.f32 %v391_v54 }
  0xaa   : > { %v360_v4 = vadd.f32 %v352_v62, %v310_v60  ;;  %v361_v5 = vadd.f32 %v353_v63, %v311_v61 }
  0xac   : > { %v381_v0 = vpop.permute.xlu1 %380 }
  0xad   : > { %v392_v2 = vadd.f32 %v381_v0, %v364_v58  ;;  %v393_v3 = vadd.f32 %v381_v0, %v365_v59 }
  0xaf   : > { %1177 = vtanh.f32 %v392_v2 }
  0xb0   : > { %1179 = vtanh.f32 %v393_v3  ;;  %v371_v7 = vpop.permute.xlu1 %370 }
  0xb1   : > { %v388_v8 = vadd.f32 %v371_v7, %v360_v4  ;;  %v389_v9 = vadd.f32 %v371_v7, %v361_v5  ;;  %v409_v4 = vpop.permute.xlu0 %408 }
  0xb2   : > { %v1170_v10 = vpop.eup %1169  ;;  %v414_v7 = vrot.slane %v409_v4, %v1381_v17 }
  0xb3   : > { %v1172_v15 = vpop.eup %1171  ;;  %1181 = vtanh.f32 %v388_v8  ;;  %v1395_v16 = vand.u32 4294901760, %v1170_v10 }
  0xb4   : > { %1183 = vtanh.f32 %v389_v9  ;;  %v1397_v18 = vand.u32 4294901760, %v1172_v15 }
  0xb5   : > { %v1174_v19 = vpop.eup %1173  ;;  %v1400_v20 = vsub.f32 %v1170_v10, %v1395_v16 }
  0xb6   : > { %v1176_v21 = vpop.eup %1175  ;;  %444 = vmatprep.subr.mxu0 %v1397_v18  ;;  %v1404_v22 = vsub.f32 %v1172_v15, %v1397_v18  ;;  %v1417_v28 = vand.u32 4294901760, %v1174_v19 }
  0xb7   : > { %446 = vmatpush1.msra.mxu0 %v1395_v16  ;;  %v535_v24 = vand.u32 4294901760, %v1400_v20  ;;  %v1412_v26 = vand.u32 4294901760, %v1176_v21 }
  0xb8   : > { %v529_v25 = vand.u32 4294901760, %v1404_v22  ;;  %v1429_v37 = vsub.f32 %v1174_v19, %v1417_v28 }
  0xb9   : > { %v536_v27 = vsub.f32 %v1400_v20, %v535_v24  ;;  %v1424_v34 = vsub.f32 %v1176_v21, %v1412_v26 }
  0xba   : > { %v530_v29 = vsub.f32 %v1404_v22, %v529_v25  ;;  %v559_v47 = vand.u32 4294901760, %v1429_v37 }
  0xbb   : > { %v537_v31 = vand.u32 4294901760, %v536_v27  ;;  %v553_v43 = vand.u32 4294901760, %v1424_v34 }
  0xbc   : > { %v1178_v32 = vpop.eup %1177  ;;  %v531_v33 = vand.u32 4294901760, %v530_v29  ;;  %v560_v57 = vsub.f32 %v1429_v37, %v559_v47 }
  0xbd   : > { %v1180_v35 = vpop.eup %1179  ;;  %v1426_v36 = vand.u32 4294901760, %v1178_v32  ;;  %v554_v54 = vsub.f32 %v1424_v34, %v553_v43 }
  0xbe   : > { %532 = vmatprep.subr.mxu1 %v531_v33  ;;  %v1431_v38 = vand.u32 4294901760, %v1180_v35  ;;  %v561_v0 = vand.u32 4294901760, %v560_v57 }
  0xbf   : > { %538 = vmatpush1.msra.mxu1 %v537_v31  ;;  %v546_v40 = vsub.f32 %v1178_v32, %v1426_v36  ;;  %v555_v62 = vand.u32 4294901760, %v554_v54 }
  0xc0   : > { %v1182_v41 = vpop.eup %1181  ;;  %448 = vmatprep.subr.mxu0 %v1431_v38  ;;  %v540_v42 = vsub.f32 %v1180_v35, %v1431_v38 }
  0xc1   : > { %v1184_v44 = vpop.eup %1183  ;;  %450 = vmatpush1.msra.mxu0 %v1426_v36  ;;  %v1441_v45 = vand.u32 4294901760, %v1182_v41  ;;  %v547_v46 = vand.u32 4294901760, %v546_v40 }
  0xc2   : > { %452 = vmatprep.subr.mxu0 %v1412_v26  ;;  %v1445_v48 = vand.u32 4294901760, %v1184_v44  ;;  %v541_v50 = vand.u32 4294901760, %v540_v42 }
  0xc3   : > { %454 = vmatpush1.msra.mxu0 %v1417_v28  ;;  %v548_v51 = vsub.f32 %v546_v40, %v547_v46  ;;  %v570_v52 = vsub.f32 %v1182_v41, %v1441_v45 }
  0xc4   : > { %456 = vmatprep.subr.mxu0 %v1445_v48  ;;  %v542_v53 = vsub.f32 %v540_v42, %v541_v50  ;;  %v564_v55 = vsub.f32 %v1184_v44, %v1445_v48 }
  0xc5   : > { %458 = vmatpush1.msra.mxu0 %v1441_v45  ;;  %v549_v56 = vand.u32 4294901760, %v548_v51  ;;  %v571_v58 = vand.u32 4294901760, %v570_v52 }
  0xc6   : > { %497 = vmatmul.mubr.f32.vlgmr.msra.gmra.mxu0 %v496_v49  ;;  %641 = vmatprep.subr.mxu0 %v1404_v22  ;;  %v543_v59 = vand.u32 4294901760, %v542_v53  ;;  %v565_v60 = vand.u32 4294901760, %v564_v55 }
  0xc7   : > { %644 = vmatpush1.msra.mxu0 %v1400_v20  ;;  %v572_v61 = vsub.f32 %v570_v52, %v571_v58  ;;  %695 = vmatprep.mubr.f32.mxu0 %v1265_v12 }
  0xc8   : > { %544 = vmatprep.subr.mxu1 %v543_v59  ;;  %647 = vmatprep.subr.mxu0 %v540_v42  ;;  %v566_v63 = vsub.f32 %v564_v55, %v565_v60 }
  0xc9   : > { %550 = vmatpush1.msra.mxu1 %v549_v56  ;;  %650 = vmatpush1.msra.mxu0 %v546_v40  ;;  %v573_v1 = vand.u32 4294901760, %v572_v61 }
  0xca   : > { %556 = vmatprep.subr.mxu1 %v555_v62  ;;  %653 = vmatprep.subr.mxu0 %v1424_v34  ;;  %v567_v2 = vand.u32 4294901760, %v566_v63 }
  0xcb   : > { %562 = vmatpush1.msra.mxu1 %v561_v0  ;;  %656 = vmatpush1.msra.mxu0 %v1429_v37 }
  0xcc   : > { %568 = vmatprep.subr.mxu1 %v567_v2  ;;  %659 = vmatprep.subr.mxu0 %v564_v55 }
  0xcd   : > { %574 = vmatpush1.msra.mxu1 %v573_v1  ;;  %662 = vmatpush1.msra.mxu0 %v570_v52 }
  0xce   : > { %609 = vmatmul.mubr.f32.vlgmr.msra.gmra.mxu1 %v1393_v11  ;;  %729 = vmatprep.subr.mxu1 %v1397_v18 }
  0xcf   : > { %813 = vmatprep.subr.mxu0 %v529_v25  ;;  %698 = vmatmul.mubr.f32.vlgmr.msra.gmra.mxu0 %v1407_v23 }
  0xd0   : > { %731 = vmatpush1.msra.mxu1 %v1395_v16  ;;  %817 = vmatpush1.msra.mxu0 %v535_v24 }
  0xd1   : > { %733 = vmatprep.subr.mxu1 %v1431_v38  ;;  %821 = vmatprep.subr.mxu0 %v541_v50 }
  0xd2   : > { %735 = vmatpush1.msra.mxu1 %v1426_v36  ;;  %825 = vmatpush1.msra.mxu0 %v547_v46 }
  0xd3   : > { %737 = vmatprep.subr.mxu1 %v1412_v26  ;;  %829 = vmatprep.subr.mxu0 %v553_v43 }
  0xd4   : > { %739 = vmatpush1.msra.mxu1 %v1417_v28  ;;  %833 = vmatpush1.msra.mxu0 %v559_v47 }
  0xd5   : > { %741 = vmatprep.subr.mxu1 %v1445_v48  ;;  %837 = vmatprep.subr.mxu0 %v565_v60 }
  0xd6   : > { %743 = vmatpush1.msra.mxu1 %v1441_v45  ;;  %776 = vmatprep.mubr.f32.mxu1 %v1265_v12 }
  0xd7   : > { %841 = vmatpush1.msra.mxu0 %v571_v58  ;;  %780 = vmatmul.mubr.f32.vlgmr.msra.gmra.mxu1 %v494_v30 }
  0xd8   : > { %907 = vmatprep.subr.mxu1 %v1397_v18  ;;  %874 = vmatprep.mubr.f32.mxu0 %v1265_v12 }
  0xd9   : > { %909 = vmatpush1.msra.mxu1 %v1395_v16  ;;  %876 = vmatmul.mubr.f32.vlgmr.msra.gmra.mxu0 %v1393_v11 }
  0xda   : > { %911 = vmatprep.subr.mxu1 %v1431_v38  ;;  %954 = vmatprep.mubr.f32.mxu1 %v1265_v12 }
  0xdb   : > { %913 = vmatpush1.msra.mxu1 %v1426_v36 }
  0xdc   : > { %915 = vmatprep.subr.mxu1 %v1412_v26 }
  0xdd   : > { %917 = vmatpush1.msra.mxu1 %v1417_v28 }
  0xde   : > { %919 = vmatprep.subr.mxu1 %v1445_v48 }
  0xdf   : > { %921 = vmatpush1.msra.mxu1 %v1441_v45 }
  0xe0   : > { %956 = vmatmul.mubr.f32.vlgmr.msra.gmra.mxu1 %v1393_v11  ;;  %v1266_v11 = vmov 1966171168  }
  0xe1   : > { %v966_v24 = vunpack.c.l.s4 %v1266_v11 }
  0xe3   : > { %v967_v27 = vunpack.c.0.s8 %v966_v24 }
  0xe5   : > { %v970_v34 = vsub.s32 %v967_v27, %v1376_v14 }
 0x186   : > { %v498_v3 = vpop.f32.mrf.mxu0 }
 0x187   : > { %v499_v9 = vadd.f32 %v498_v3, %v414_v7 }
 0x188   : > { %v500_v6 = vpop.f32.mrf.mxu0 }
 0x189   : > { %v501_v10 = vadd.f32 %v500_v6, %v414_v7 }
 0x18e   : > { %v610_v5 = vpop.f32.mrf.mxu1 }
 0x18f   : > { %v699_v12 = vpop.f32.mrf.mxu0  ;;  %v611_v15 = vadd.f32 %v610_v5, %v499_v9 }
 0x190   : > { %v612_v8 = vpop.f32.mrf.mxu1 }
 0x191   : > { %v613_v16 = vadd.f32 %v612_v8, %v501_v10  ;;  %v701_v19 = vpop.f32.mrf.mxu0  ;;  %v700_v22 = vadd.f32 %v699_v12, %v611_v15 }
 0x193   : > { %v702_v23 = vadd.f32 %v701_v19, %v613_v16 }
 0x197   : > { %v781_v18 = vpop.f32.mrf.mxu1 }
 0x198   : > { %v782_v25 = vadd.f32 %v781_v18, %v700_v22 }
 0x199   : > { %v783_v20 = vpop.f32.mrf.mxu1  ;;  %v877_v21 = vpop.f32.mrf.mxu0 }
 0x19a   : > { %v784_v26 = vadd.f32 %v783_v20, %v702_v23  ;;  %v878_v29 = vadd.f32 %v877_v21, %v782_v25 }
 0x19b   : > { %v879_v17 = vpop.f32.mrf.mxu0 }
 0x19c   : > { %v880_v30 = vadd.f32 %v879_v17, %v784_v26 }
 0x1a0   : > { %v957_v28 = vpop.f32.mrf.mxu1 }
 0x1a1   : > { %v958_v32 = vadd.f32 %v957_v28, %v878_v29 }
 0x1a2   : > { %v959_v31 = vpop.f32.mrf.mxu1 }
 0x1a3   : > { %v960_v33 = vadd.f32 %v959_v31, %v880_v30 }
 0x1a5   : > { %v964_v35 = vcombine.low %v958_v32, %v960_v33 }
 0x1a7   : > { %v971_v36 = vrot.slane %v964_v35, %v970_v34 }
 0x1a9   : > { %v978_v37 = vrot.slane %v971_v36, %v970_v34 }
 0x1ab   : > { %984 = vst.msk [vmem:[%s249_s12] sm:$0x3] %vm982_vm1, %v978_v37 }
 0x1ac   : > { %1198 = shalt.err (!%p1195_p5)
}
 0x1ad   : > { %s1199_s26 = scalar_lea.hbm %s1000_s16, 32  ;;  %s1203_s8 = scalar_lea.hbm %s1535_s5, 64 }
 0x1ae   : > { %p1200_p6 = scmp.ne.s32.totalorder %s1000_s16, %s1199_s26  ;;  %p1204_p10 = scmp.lt.s32.totalorder %s1000_s16, %s1535_s5 }
 0x1af   : > { %p1205_p11 = scmp.lt.s32.totalorder %s1203_s8, %s1199_s26 }
 0x1b0   : > { %p1201_p7 = pnand %p1200_p6, %p1341_p4 }
 0x1b1   : > { %p1206_p12 = por %p1205_p11, %p1204_p10 }
 0x1b2   : > { %p1202_p9 = pneg %p1201_p7 }
 0x1b4   : > { %p1207_p13 = pnand %p1206_p12, %p1202_p9 }
 0x1b6   : > { %1210 = shalt.err (!%p1207_p13)
}
 0x1b7   : > { %1103 = dma.vmem_to_hbm [thread:$0]  (%p1341_p4), %s1003_s13, 32, %s1000_s16, %s986_s17  }
 0x1b8 PF: > { %p1109_p0 = scmp.ge.s32.totalorder %s1261_s25, 2  ;;  %s1014_s11 = sand.u32 1, %s1241_s20  }
 0x1b9   : > { %s1015_s12 = scalar_lea.sflag [#allocation4], %s1014_s11 }
 0x1ba   : > { %p1106_p1 = pnand %p1109_p0, %p1348_p8 }
 0x1bc   : > { %p1107_p2 = pneg %p1106_p1 }
 0x1be   : > { %1236 = dma.done.wait (%p1107_p2), %s1015_s12, 32  }
 0x1bf   : > { %1238 = vsyncadd (%p1107_p2), %s1015_s12, 4294967264  ;;  %s20_s25 = sadd.s32 1, %s1261_s25   ;;  %s1538_s20 = smov %s1245_s21 }
 0x1c0   : > { %p17_p3 = scmp.ge.s32.totalorder %s20_s25, 4   ;;  %s1539_s21 = smov %s1249_s22 }
 0x1c1   : > { %s1540_s22 = smov %s1354_s7  ;;  %s1541_s23 = smov %s1257_s24 }
 0x1c2   : > { %s1542_s24 = smov %s1544_s27  ;;  %19 = sbr.rel (!%p17_p3) target bundleno = 7 (0x7), region = 78 }
 0x1c7   :  { %1020 = vsyncpa [#allocation4], 1 }
 0x1c8   :  { %1022 = vsyncpa [#allocation4 + $0x1], 1 }

</bundles_post_ra>
